<compile_context>
chip_gen: v6e
topology: v6e:2x2x1
jax: 0.10.0
libtpu: 0.0.40
codegen_flags: <defaults>
</compile_context>

<pallas_src>
import jax
import jax.numpy as jnp
from jax.experimental import pallas as pl
from jax.experimental.pallas import tpu as pltpu

_LANE = 1024                          # lane-dense last dim (8 * 128)
_TARGET_TILE_BYTES = 4 * 1024 * 1024  # ~4 MiB per tile; ~16 MiB live (2 bufs x in+out)


def _copy_kernel(x_ref, o_ref):
    # Pure pass-through: BaseModel.get_current_visuals() returns self.input.
    o_ref[...] = x_ref[...]


def _materialized_copy(x: jax.Array) -> jax.Array:
    """Tiled, lane-dense HBM->VMEM->HBM copy of `x` (any shape/dtype)."""
    orig_shape = x.shape
    total = x.size
    itemsize = jnp.dtype(x.dtype).itemsize

    # Rows per grid step, sized in bytes (f32 -> 1024 rows, bf16 -> 2048,
    # int8 -> 4096).  Always a multiple of 8 (sublane constraint).
    tile_rows = max(8, _TARGET_TILE_BYTES // (_LANE * itemsize))

    m0 = pl.cdiv(total, _LANE)            # rows of the (m0, 1024) slab
    aligned = (total == m0 * _LANE)

    flat = x.reshape(-1)
    if not aligned:
        # Ragged tail: pad only up to the next 1024-elem row (< 4 KiB of pad).
        flat = jnp.pad(flat, (0, m0 * _LANE - total))
    slab = flat.reshape(m0, _LANE)

    # If the whole array fits in one tile, the block equals the full array
    # dims (allowed even when m0 % 8 != 0); otherwise tile at tile_rows and
    # let Pallas mask the partial boundary block via the cdiv grid.
    tm = m0 if m0 <= tile_rows else tile_rows
    grid = (pl.cdiv(m0, tm),)

    # Alias only when the slab is a fresh padded intermediate.  On the aligned
    # path the slab is a reshape view of the caller's x, and the output must
    # be a distinct buffer to honor the materialize_copy contract.
    aliases = {} if aligned else {0: 0}

    out = pl.pallas_call(
        _copy_kernel,
        out_shape=jax.ShapeDtypeStruct(slab.shape, slab.dtype),
        grid=grid,
        in_specs=[pl.BlockSpec((tm, _LANE), lambda i: (i, 0))],
        out_specs=pl.BlockSpec((tm, _LANE), lambda i: (i, 0)),
        input_output_aliases=aliases,
        cost_estimate=pl.CostEstimate(
            flops=0, transcendentals=0, bytes_accessed=2 * slab.nbytes),
        compiler_params=pltpu.CompilerParams(
            dimension_semantics=("parallel",),
            vmem_limit_bytes=32 << 20),
    )(slab)

    if aligned:
        # Free (metadata-only) reshape back to the original NCHW shape.
        return out.reshape(orig_shape)
    # Ragged path: drop the < 4 KiB padded tail, restore the original shape.
    return out.reshape(-1)[:total].reshape(orig_shape)


def base_model_visuals(x: jax.Array, *, materialize_copy: bool = False) -> jax.Array:
    """Equivalent of BaseModel.set_input(x); BaseModel.get_current_visuals().

    Default (fast) path: return `x` unchanged -- no kernel, no HBM traffic,
    exactly matching the PyTorch reference which returns the stored tensor.
    With materialize_copy=True a real, distinct device copy is produced via
    the tiled Pallas copy kernel above.
    """
    if not materialize_copy:
        return x
    return _materialized_copy(x)


def base_model_forward(x: jax.Array):
    """BaseModel.forward(x) is `pass` in PyTorch -> returns None."""
    # TODO(synk): forward() has no body in the reference module; nothing to lower.
    return None


if __name__ == "__main__":
    key = jax.random.PRNGKey(0)
    x = jax.random.normal(key, (2, 4, 16, 16), dtype=jnp.float32)

    # forward() semantics: returns None (no compute).
    assert base_model_forward(x) is None

    # Hot path: identity, no kernel launch.
    fast = base_model_visuals(x)
    assert fast is x

    # Materialized-copy path (aligned size: 2*4*16*16 = 2048 = 2 rows of 1024,
    # so no pad and no slice -- kernel-only traffic).
    visuals = base_model_visuals(x, materialize_copy=True)
    jax.block_until_ready(visuals)
    assert visuals.shape == x.shape and visuals.dtype == x.dtype
    assert bool(jnp.all(visuals == x))

    # Ragged (non-lane-aligned) shape: exercises the small-tail pad path.
    y = jax.random.normal(jax.random.PRNGKey(1), (2, 3, 17, 19), jnp.float32)
    y_out = base_model_visuals(y, materialize_copy=True)
    jax.block_until_ready(y_out)
    assert y_out.shape == y.shape and bool(jnp.all(y_out == y))

    # bf16 input: byte-sized tiling picks 2048 rows/tile for this dtype.
    z = jax.random.normal(jax.random.PRNGKey(2), (4, 8, 32, 32), jnp.bfloat16)
    z_out = base_model_visuals(z, materialize_copy=True)
    jax.block_until_ready(z_out)
    assert z_out.dtype == z.dtype and bool(jnp.all(z_out == z))

    print("KERNEL_OK")
</pallas_src>

<mosaic_0001>
module attributes {stable_mosaic.version = 11 : i64} {
  func.func @_copy_kernel(%arg0: i32, %arg1: memref<2x1024xf32, #tpu.memory_space<vmem>>, %arg2: memref<2x1024xf32, #tpu.memory_space<vmem>>) attributes {dimension_semantics = [#tpu.dimension_semantics<parallel>], iteration_bounds = array<i64: 1>, scalar_prefetch = 0 : i64, scratch_operands = 0 : i64, tpu.core_type = #tpu.core_type<tc>, window_params = [{transform_indices = @transform_0, window_bounds = array<i64: 2, 1024>}, {transform_indices = @transform_1, window_bounds = array<i64: 2, 1024>}]} {
    %c0 = arith.constant 0 : index
    %c0_0 = arith.constant 0 : index
    %0 = vector.load %arg1[%c0, %c0_0] : memref<2x1024xf32, #tpu.memory_space<vmem>>, vector<2x1024xf32>
    %c0_1 = arith.constant 0 : index
    %c0_2 = arith.constant 0 : index
    %1 = vector.load %arg2[%c0_1, %c0_2] : memref<2x1024xf32, #tpu.memory_space<vmem>>, vector<2x1024xf32>
    tpu.vector_store %arg2[%c0_1, %c0_2], %0 {strides = array<i32>} : memref<2x1024xf32, #tpu.memory_space<vmem>>, vector<2x1024xf32>,
    return
  }
  func.func @transform_0(%arg0: i32) -> (i32, i32) {
    %c0_i32 = arith.constant 0 : i32
    %c0_i32_0 = arith.constant 0 : i32
    return %arg0, %c0_i32 : i32, i32
  }
  func.func @transform_1(%arg0: i32) -> (i32, i32) {
    %c0_i32 = arith.constant 0 : i32
    %c0_i32_0 = arith.constant 0 : i32
    return %arg0, %c0_i32 : i32, i32
  }
}

</mosaic_0001>

<bundles_post_ra>
// kernel: tpu_custom_call.1
= control target key start
LH: loop header
LB: loop body
LE: loop exit
PB: predicated region body
PF: predicated region fallthrough
CT: control target
= control target key end

     0   :  { %6 = vsyncpa [#allocation3], 0  ;;  %s104_s0 = inlined_call_operand.hbm [shape: f32[2,1024], index: 0, kind: input, shape index: {}]   ;;  %s105_s1 = inlined_call_operand.hbm [shape: f32[2,1024], index: 1, kind: output, shape index: {}]  }
   0x1   :  { %7 = vsyncpa [#allocation4], 0  ;;  %s86_s6 = smov [#allocation2]  }
   0x2   :  { %s14_s7 = sshll.u32 %s86_s6, 4  ;;  %s15_s7 = int_to_ptr.vmem [resolvable:$true] %s14_s7 }
   0x3   :  { %s50_s8 = scalar_lea.vmem %s15_s7, 256  ;;  %p55_p1 = scmp.lt.s32.totalorder %s15_s7, %s15_s7 }
   0x4   :  { %p51_p0 = scmp.ne.s32.totalorder %s15_s7, %s50_s8  ;;  %p56_p2 = scmp.lt.s32.totalorder %s50_s8, %s50_s8 }
   0x6   :  { %p57_p3 = por %p56_p2, %p55_p1 }
   0x8   :  { %p58_p4 = pnand %p57_p3, %p51_p0 }
   0xa   :  { %61 = shalt.err (!%p58_p4)
}
   0xb   :  { %17 = dma.hbm_to_vmem [thread:$0]  %s104_s0, 256, %s15_s7, [#allocation3]  }
   0xc   :  { %82 = dma.done.wait [#allocation3], 256  }
   0xd   :  { %83 = vsyncadd [#allocation3], 4294967040  ;;  %s87_s11 = smov [#allocation5]   ;;  %v21_v0 = vld [vmem:[#allocation2] sm:$0xff]  ;;  %v22_v1 = vld [vmem:[#allocation2 + $0x8] sm:$0xff] }
   0xe   :  { %s31_s12 = sshll.u32 %s87_s11, 4  ;;  %23 = vst [vmem:[#allocation5] sm:$0xff] %v21_v0  ;;  %24 = vst [vmem:[#allocation5 + $0x8] sm:$0xff] %v22_v1  ;;  %s32_s12 = int_to_ptr.vmem [resolvable:$true] %s31_s12 }
   0xf   :  { %s62_s13 = scalar_lea.vmem %s32_s12, 256  ;;  %p67_p6 = scmp.lt.s32.totalorder %s32_s12, %s32_s12 }
  0x10   :  { %p63_p5 = scmp.ne.s32.totalorder %s32_s12, %s62_s13  ;;  %p68_p7 = scmp.lt.s32.totalorder %s62_s13, %s62_s13 }
  0x12   :  { %p69_p8 = por %p68_p7, %p67_p6 }
  0x14   :  { %p70_p9 = pnand %p69_p8, %p63_p5 }
  0x16   :  { %73 = shalt.err (!%p70_p9)
}
  0x17   :  { %34 = dma.vmem_to_hbm [thread:$0]  %s32_s12, 256, %s105_s1, [#allocation4]  }
  0x18   :  { %84 = dma.done.wait [#allocation4], 256  }
  0x19   :  { %85 = vsyncadd [#allocation4], 4294967040 }
  0x1a   :  { %38 = vsyncpa [#allocation3], 1 }
  0x1b   :  { %39 = vsyncpa [#allocation4], 1 }

</bundles_post_ra>
